<compile_context>
chip_gen: v5e
topology: v5e:2x2
jax: 0.10.0
libtpu: 0.0.40
codegen_flags: <defaults>
</compile_context>

<pallas_src>
import jax
import jax.numpy as jnp
import numpy as np
from jax.experimental import pallas as pl
from jax.experimental.pallas import tpu as pltpu


def _interp_matrix_1d(src_size: int) -> jnp.ndarray:
    """(src, 2*src) matrix M with  up(v) = v @ M  (PyTorch bilinear, align_corners=False)."""
    dst = 2 * src_size
    p = jnp.arange(dst, dtype=jnp.float32)
    src = jnp.maximum((p + 0.5) * 0.5 - 0.5, 0.0)      # PyTorch clamps negative src to 0
    i0 = jnp.clip(jnp.floor(src).astype(jnp.int32), 0, src_size - 1)
    i1 = jnp.clip(i0 + 1, 0, src_size - 1)
    f = src - i0.astype(jnp.float32)
    j = jnp.arange(src_size, dtype=jnp.int32)[:, None]
    mat = (1.0 - f)[None, :] * (j == i0[None, :]) + f[None, :] * (j == i1[None, :])
    return mat.astype(jnp.float32)


def _make_kernel(cin: int, h: int, co_t: int):
    """Fused: column-up (MXU) -> per-row 1x1 channel mix -> per-channel row-up + skip add."""

    def kernel(x_ref, cu_ref, ru_ref, w_ref, y_ref, o_ref, xc_ref, mx_ref):
        # x_ref : (1, Cin*H, W)      input block (free NCHW view), rows ordered (c, h)
        # cu_ref: (W, TW)            column-upsample matrix tile   (grid-constant)
        # ru_ref: (H2, H)            row-upsample matrix           (grid-constant)
        # w_ref : (CO_T, Cin)        1x1-conv weight block
        # y_ref : (1, CO_T, H2, TW)  skip-connection block
        # o_ref : (1, CO_T, H2, TW)  output block (lane-dense store when W2 % 128 == 0)
        # xc_ref: (Cin*H, TW)        scratch: column-upsampled x, rows ordered (c, h)
        # mx_ref: (H*CO_T, TW)       scratch: channel-mixed rows, rows ordered (h, o)

        # 1) Column upsample: one MXU matmul over all input channels/rows.
        xc_ref[...] = jnp.dot(
            x_ref[0], cu_ref[...], preferred_element_type=jnp.float32
        ).astype(xc_ref.dtype)

        # 2) 1x1-conv channel mix, one source row h at a time.  The strided
        #    sublane reads (stride = H over the (c, h)-ordered rows) are the
        #    layout bridge that replaces the old kron(Wconv, Rrow): no Cin-x
        #    FLOP inflation, no O(Cout*Cin*H*H2) resident operand.
        for hh in range(h):
            cols = xc_ref[pl.ds(hh, cin, stride=h), :]                      # (Cin, TW)
            mixed = jnp.dot(w_ref[...], cols,
                            preferred_element_type=jnp.float32)             # (CO_T, TW)
            mx_ref[pl.ds(hh * co_t, co_t), :] = mixed.astype(mx_ref.dtype)

        # 3) Row upsample + skip add, one output channel at a time (K = H is
        #    tiny, so per-channel 2-D dots cost the same as a batched dot and
        #    keep every op on plainly-supported primitives).
        for oc in range(co_t):
            rows = mx_ref[pl.ds(oc, h, stride=co_t), :]                      # (H, TW)
            up = jnp.dot(ru_ref[...], rows,
                         preferred_element_type=jnp.float32)                 # (H2, TW)
            o_ref[0, oc] = (up + y_ref[0, oc].astype(jnp.float32)).astype(o_ref.dtype)

    return kernel


def _vmem_bytes(cin, h, w, co_t, tw, op_b, y_b, out_b):
    """Rough per-step VMEM estimate: double-buffered windows + single scratch."""
    h2 = 2 * h
    blocks = (cin * h * w + w * tw + h2 * h + co_t * cin) * op_b
    blocks += co_t * h2 * tw * (y_b + out_b)
    scratch = (cin * h + co_t * h) * tw * op_b
    return 2 * blocks + scratch


def _choose_tiles(cin, h, w, cout, op_b, y_b, out_b, budget):
    """Pick (lane tile over W2, output-channel block) under the VMEM budget."""
    w2 = 2 * w
    tw_cands = [d for d in (1024, 512, 256, 128) if w2 % d == 0]
    if w2 not in tw_cands:
        tw_cands.append(w2)  # full width is always legal (only option when W2 < 128)
    co_cands = [d for d in range(cout, 0, -1)
                if cout % d == 0 and (d == cout or d % 8 == 0)]
    for tw in tw_cands:
        for co_t in co_cands:
            if _vmem_bytes(cin, h, w, co_t, tw, op_b, y_b, out_b) <= budget:
                return tw, co_t
    return tw_cands[-1], co_cands[-1]


def skip_upsample(x_nchw, y_nchw, conv_w, *,
                  compute_dtype=jnp.bfloat16,
                  out_dtype=None,
                  alias_skip=False,
                  vmem_budget_bytes=40 * 2**20):
    """SkipUpSample.forward: conv1x1(bilinear_up2x(x)) + y.  NCHW in / NCHW out."""
    n, cin, h, w = map(int, x_nchw.shape)
    cout = int(conv_w.shape[0])
    h2, w2 = 2 * h, 2 * w
    assert y_nchw.shape == (n, cout, h2, w2)
    assert conv_w.shape == (cout, cin, 1, 1)
    out_dtype = y_nchw.dtype if out_dtype is None else out_dtype

    # Tiny constant operands (constant index_map -> fetched once, VMEM resident).
    col_mat = _interp_matrix_1d(w).astype(compute_dtype)        # (W, W2)
    row_mat = _interp_matrix_1d(h).T.astype(compute_dtype)      # (H2, H)
    wmat = conv_w.reshape(cout, cin).astype(compute_dtype)      # (Cout, Cin)
    x2d = x_nchw.astype(compute_dtype).reshape(n, cin * h, w)   # free NCHW view

    op_b = jnp.dtype(compute_dtype).itemsize
    y_b = jnp.dtype(y_nchw.dtype).itemsize
    o_b = jnp.dtype(out_dtype).itemsize
    tw, co_t = _choose_tiles(cin, h, w, cout, op_b, y_b, o_b, vmem_budget_bytes)
    est = _vmem_bytes(cin, h, w, co_t, tw, op_b, y_b, o_b)
    # Raise v5e's 16 MiB default, stay well under v7x's 64 MiB physical VMEM.
    vmem_limit = int(min(48 * 2**20, max(32 * 2**20, 2 * est)))

    grid = (n, cout // co_t, w2 // tw)
    aliases = {4: 0} if (alias_skip and y_nchw.dtype == jnp.dtype(out_dtype)) else {}

    out = pl.pallas_call(
        _make_kernel(cin, h, co_t),
        out_shape=jax.ShapeDtypeStruct((n, cout, h2, w2), out_dtype),
        grid=grid,
        in_specs=[
            pl.BlockSpec((1, cin * h, w), lambda b, c, j: (b, 0, 0)),
            pl.BlockSpec((w, tw), lambda b, c, j: (0, j)),
            pl.BlockSpec((h2, h), lambda b, c, j: (0, 0)),
            pl.BlockSpec((co_t, cin), lambda b, c, j: (c, 0)),
            pl.BlockSpec((1, co_t, h2, tw), lambda b, c, j: (b, c, 0, j)),
        ],
        out_specs=pl.BlockSpec((1, co_t, h2, tw), lambda b, c, j: (b, c, 0, j)),
        scratch_shapes=[
            pltpu.VMEM((cin * h, tw), compute_dtype),
            pltpu.VMEM((h * co_t, tw), compute_dtype),
        ],
        compiler_params=pltpu.CompilerParams(
            dimension_semantics=("parallel", "parallel", "parallel"),
            vmem_limit_bytes=vmem_limit),
        input_output_aliases=aliases,
    )(x2d, col_mat, row_mat, wmat, y_nchw)
    return out


if __name__ == "__main__":
    # Decoder1(n_feat=4, scale_unetfeats=4).up21 == SkipUpSample(4, 4):
    # x: (N, n_feat + scale_unetfeats, H, W), y: (N, n_feat, 2H, 2W).
    n_feat, scale_unetfeats = 4, 4
    n, h, w = 2, 16, 16
    cin = n_feat + scale_unetfeats
    cout = n_feat

    key = jax.random.PRNGKey(0)
    kx, ky, kw = jax.random.split(key, 3)
    x = jax.random.normal(kx, (n, cin, h, w), jnp.float32)
    y = jax.random.normal(ky, (n, cout, 2 * h, 2 * w), jnp.float32)
    bound = 1.0 / float(np.sqrt(cin))
    conv_w = jax.random.uniform(kw, (cout, cin, 1, 1), jnp.float32, -bound, bound)

    # Independent gather/lerp reference implementing PyTorch's
    # align_corners=False rule directly (not via the interpolation matrices).
    def ref_up2(v):
        _, _, hh, ww = v.shape

        def idx(size):
            p = jnp.arange(2 * size, dtype=jnp.float32)
            s = jnp.maximum((p + 0.5) * 0.5 - 0.5, 0.0)
            i0 = jnp.clip(jnp.floor(s).astype(jnp.int32), 0, size - 1)
            i1 = jnp.clip(i0 + 1, 0, size - 1)
            return i0, i1, s - i0.astype(jnp.float32)

        r0, r1, rf = idx(hh)
        c0, c1, cf = idx(ww)
        rows = (v[:, :, r0, :] * (1.0 - rf)[None, None, :, None]
                + v[:, :, r1, :] * rf[None, None, :, None])
        return rows[:, :, :, c0] * (1.0 - cf) + rows[:, :, :, c1] * cf

    ref = jnp.einsum("oc,nchw->nohw", conv_w.reshape(cout, cin), ref_up2(x)) + y

    # (a) f32 end-to-end: tight numerical check of the fused kernel math.
    out_f32 = jax.block_until_ready(
        skip_upsample(x, y, conv_w, compute_dtype=jnp.float32))
    assert out_f32.shape == ref.shape == (n, cout, 2 * h, 2 * w)
    np.testing.assert_allclose(np.asarray(out_f32), np.asarray(ref),
                               rtol=2e-5, atol=2e-5)

    # (b) bf16 operands + bf16 skip/output: the fast path from the perf review
    #     (halves y/out HBM traffic; f32 MXU accumulation kept, so only bf16
    #     rounding of inputs/intermediates/output -> loose tolerance).
    out_bf16 = jax.block_until_ready(
        skip_upsample(x, y.astype(jnp.bfloat16), conv_w))
    assert out_bf16.dtype == jnp.bfloat16
    np.testing.assert_allclose(np.asarray(out_bf16.astype(jnp.float32)),
                               np.asarray(ref), rtol=5e-2, atol=5e-2)

    print("KERNEL_OK")
</pallas_src>

<mosaic_0001>
module attributes {stable_mosaic.version = 11 : i64} {
  func.func @kernel(%arg0: i32, %arg1: i32, %arg2: i32, %arg3: memref<1x128x16xf32, #tpu.memory_space<vmem>>, %arg4: memref<16x32xf32, #tpu.memory_space<vmem>>, %arg5: memref<32x16xf32, #tpu.memory_space<vmem>>, %arg6: memref<4x8xf32, #tpu.memory_space<vmem>>, %arg7: memref<1x4x32x32xf32, #tpu.memory_space<vmem>>, %arg8: memref<1x4x32x32xf32, #tpu.memory_space<vmem>>, %arg9: memref<128x32xf32, #tpu.memory_space<vmem>>, %arg10: memref<64x32xf32, #tpu.memory_space<vmem>>) attributes {dimension_semantics = [#tpu.dimension_semantics<parallel>, #tpu.dimension_semantics<parallel>, #tpu.dimension_semantics<parallel>], iteration_bounds = array<i64: 2, 1, 1>, scalar_prefetch = 0 : i64, scratch_operands = 2 : i64, tpu.core_type = #tpu.core_type<tc>, window_params = [{transform_indices = @transform_0, window_bounds = array<i64: 1, 128, 16>}, {transform_indices = @transform_1, window_bounds = array<i64: 16, 32>}, {pipeline_mode = #tpu.pipeline_mode<synchronous>, transform_indices = @transform_2, window_bounds = array<i64: 32, 16>}, {transform_indices = @transform_3, window_bounds = array<i64: 4, 8>}, {transform_indices = @transform_4, window_bounds = array<i64: 1, 4, 32, 32>}, {transform_indices = @transform_5, window_bounds = array<i64: 1, 4, 32, 32>}]} {
    %c0 = arith.constant 0 : index
    %c0_0 = arith.constant 0 : index
    %c0_1 = arith.constant 0 : index
    %0 = vector.load %arg3[%c0, %c0_0, %c0_1] : memref<1x128x16xf32, #tpu.memory_space<vmem>>, vector<1x128x16xf32>
    %1 = vector.shape_cast %0 : vector<1x128x16xf32> to vector<128x16xf32>
    %c0_2 = arith.constant 0 : index
    %c0_3 = arith.constant 0 : index
    %2 = vector.load %arg4[%c0_2, %c0_3] : memref<16x32xf32, #tpu.memory_space<vmem>>, vector<16x32xf32>
    %cst = arith.constant dense<0.000000e+00> : vector<128x32xf32>
    %3 = tpu.matmul %1, %2, %cst {dimension_numbers = #tpu.dot_dimension_numbers<[1], [0], [0], [1], [0, 0, 1, 1], [], []>} : vector<128x16xf32>, vector<16x32xf32>, vector<128x32xf32> -> vector<128x32xf32>
    %c0_4 = arith.constant 0 : index
    %c0_5 = arith.constant 0 : index
    %4 = vector.load %arg9[%c0_4, %c0_5] : memref<128x32xf32, #tpu.memory_space<vmem>>, vector<128x32xf32>
    tpu.vector_store %arg9[%c0_4, %c0_5], %3 {strides = array<i32>} : memref<128x32xf32, #tpu.memory_space<vmem>>, vector<128x32xf32>,
    %c0_6 = arith.constant 0 : index
    %c0_7 = arith.constant 0 : index
    %5 = tpu.strided_load %arg9[%c0_6, %c0_7] {strides = array<i32: 16, 1>} : memref<128x32xf32, #tpu.memory_space<vmem>>, vector<8x32xf32>
    %c0_8 = arith.constant 0 : index
    %c0_9 = arith.constant 0 : index
    %6 = vector.load %arg6[%c0_8, %c0_9] : memref<4x8xf32, #tpu.memory_space<vmem>>, vector<4x8xf32>
    %cst_10 = arith.constant dense<0.000000e+00> : vector<4x32xf32>
    %7 = tpu.matmul %6, %5, %cst_10 {dimension_numbers = #tpu.dot_dimension_numbers<[1], [0], [0], [1], [0, 0, 1, 1], [], []>} : vector<4x8xf32>, vector<8x32xf32>, vector<4x32xf32> -> vector<4x32xf32>
    %c0_11 = arith.constant 0 : index
    %c0_12 = arith.constant 0 : index
    %8 = vector.load %arg10[%c0_11, %c0_12] : memref<64x32xf32, #tpu.memory_space<vmem>>, vector<4x32xf32>
    tpu.vector_store %arg10[%c0_11, %c0_12], %7 {strides = array<i32>} : memref<64x32xf32, #tpu.memory_space<vmem>>, vector<4x32xf32>,
    %c1 = arith.constant 1 : index
    %c0_13 = arith.constant 0 : index
    %9 = tpu.strided_load %arg9[%c1, %c0_13] {strides = array<i32: 16, 1>} : memref<128x32xf32, #tpu.memory_space<vmem>>, vector<8x32xf32>
    %c0_14 = arith.constant 0 : index
    %c0_15 = arith.constant 0 : index
    %10 = vector.load %arg6[%c0_14, %c0_15] : memref<4x8xf32, #tpu.memory_space<vmem>>, vector<4x8xf32>
    %cst_16 = arith.constant dense<0.000000e+00> : vector<4x32xf32>
    %11 = tpu.matmul %10, %9, %cst_16 {dimension_numbers = #tpu.dot_dimension_numbers<[1], [0], [0], [1], [0, 0, 1, 1], [], []>} : vector<4x8xf32>, vector<8x32xf32>, vector<4x32xf32> -> vector<4x32xf32>
    %c4 = arith.constant 4 : index
    %c0_17 = arith.constant 0 : index
    %12 = vector.load %arg10[%c4, %c0_17] : memref<64x32xf32, #tpu.memory_space<vmem>>, vector<4x32xf32>
    tpu.vector_store %arg10[%c4, %c0_17], %11 {strides = array<i32>} : memref<64x32xf32, #tpu.memory_space<vmem>>, vector<4x32xf32>,
    %c2 = arith.constant 2 : index
    %c0_18 = arith.constant 0 : index
    %13 = tpu.strided_load %arg9[%c2, %c0_18] {strides = array<i32: 16, 1>} : memref<128x32xf32, #tpu.memory_space<vmem>>, vector<8x32xf32>
    %c0_19 = arith.constant 0 : index
    %c0_20 = arith.constant 0 : index
    %14 = vector.load %arg6[%c0_19, %c0_20] : memref<4x8xf32, #tpu.memory_space<vmem>>, vector<4x8xf32>
    %cst_21 = arith.constant dense<0.000000e+00> : vector<4x32xf32>
    %15 = tpu.matmul %14, %13, %cst_21 {dimension_numbers = #tpu.dot_dimension_numbers<[1], [0], [0], [1], [0, 0, 1, 1], [], []>} : vector<4x8xf32>, vector<8x32xf32>, vector<4x32xf32> -> vector<4x32xf32>
    %c8 = arith.constant 8 : index
    %c0_22 = arith.constant 0 : index
    %16 = vector.load %arg10[%c8, %c0_22] : memref<64x32xf32, #tpu.memory_space<vmem>>, vector<4x32xf32>
    tpu.vector_store %arg10[%c8, %c0_22], %15 {strides = array<i32>} : memref<64x32xf32, #tpu.memory_space<vmem>>, vector<4x32xf32>,
    %c3 = arith.constant 3 : index
    %c0_23 = arith.constant 0 : index
    %17 = tpu.strided_load %arg9[%c3, %c0_23] {strides = array<i32: 16, 1>} : memref<128x32xf32, #tpu.memory_space<vmem>>, vector<8x32xf32>
    %c0_24 = arith.constant 0 : index
    %c0_25 = arith.constant 0 : index
    %18 = vector.load %arg6[%c0_24, %c0_25] : memref<4x8xf32, #tpu.memory_space<vmem>>, vector<4x8xf32>
    %cst_26 = arith.constant dense<0.000000e+00> : vector<4x32xf32>
    %19 = tpu.matmul %18, %17, %cst_26 {dimension_numbers = #tpu.dot_dimension_numbers<[1], [0], [0], [1], [0, 0, 1, 1], [], []>} : vector<4x8xf32>, vector<8x32xf32>, vector<4x32xf32> -> vector<4x32xf32>
    %c12 = arith.constant 12 : index
    %c0_27 = arith.constant 0 : index
    %20 = vector.load %arg10[%c12, %c0_27] : memref<64x32xf32, #tpu.memory_space<vmem>>, vector<4x32xf32>
    tpu.vector_store %arg10[%c12, %c0_27], %19 {strides = array<i32>} : memref<64x32xf32, #tpu.memory_space<vmem>>, vector<4x32xf32>,
    %c4_28 = arith.constant 4 : index
    %c0_29 = arith.constant 0 : index
    %21 = tpu.strided_load %arg9[%c4_28, %c0_29] {strides = array<i32: 16, 1>} : memref<128x32xf32, #tpu.memory_space<vmem>>, vector<8x32xf32>
    %c0_30 = arith.constant 0 : index
    %c0_31 = arith.constant 0 : index
    %22 = vector.load %arg6[%c0_30, %c0_31] : memref<4x8xf32, #tpu.memory_space<vmem>>, vector<4x8xf32>
    %cst_32 = arith.constant dense<0.000000e+00> : vector<4x32xf32>
    %23 = tpu.matmul %22, %21, %cst_32 {dimension_numbers = #tpu.dot_dimension_numbers<[1], [0], [0], [1], [0, 0, 1, 1], [], []>} : vector<4x8xf32>, vector<8x32xf32>, vector<4x32xf32> -> vector<4x32xf32>
    %c16 = arith.constant 16 : index
    %c0_33 = arith.constant 0 : index
    %24 = vector.load %arg10[%c16, %c0_33] : memref<64x32xf32, #tpu.memory_space<vmem>>, vector<4x32xf32>
    tpu.vector_store %arg10[%c16, %c0_33], %23 {strides = array<i32>} : memref<64x32xf32, #tpu.memory_space<vmem>>, vector<4x32xf32>,
    %c5 = arith.constant 5 : index
    %c0_34 = arith.constant 0 : index
    %25 = tpu.strided_load %arg9[%c5, %c0_34] {strides = array<i32: 16, 1>} : memref<128x32xf32, #tpu.memory_space<vmem>>, vector<8x32xf32>
    %c0_35 = arith.constant 0 : index
    %c0_36 = arith.constant 0 : index
    %26 = vector.load %arg6[%c0_35, %c0_36] : memref<4x8xf32, #tpu.memory_space<vmem>>, vector<4x8xf32>
    %cst_37 = arith.constant dense<0.000000e+00> : vector<4x32xf32>
    %27 = tpu.matmul %26, %25, %cst_37 {dimension_numbers = #tpu.dot_dimension_numbers<[1], [0], [0], [1], [0, 0, 1, 1], [], []>} : vector<4x8xf32>, vector<8x32xf32>, vector<4x32xf32> -> vector<4x32xf32>
    %c20 = arith.constant 20 : index
    %c0_38 = arith.constant 0 : index
    %28 = vector.load %arg10[%c20, %c0_38] : memref<64x32xf32, #tpu.memory_space<vmem>>, vector<4x32xf32>
    tpu.vector_store %arg10[%c20, %c0_38], %27 {strides = array<i32>} : memref<64x32xf32, #tpu.memory_space<vmem>>, vector<4x32xf32>,
    %c6 = arith.constant 6 : index
    %c0_39 = arith.constant 0 : index
    %29 = tpu.strided_load %arg9[%c6, %c0_39] {strides = array<i32: 16, 1>} : memref<128x32xf32, #tpu.memory_space<vmem>>, vector<8x32xf32>
    %c0_40 = arith.constant 0 : index
    %c0_41 = arith.constant 0 : index
    %30 = vector.load %arg6[%c0_40, %c0_41] : memref<4x8xf32, #tpu.memory_space<vmem>>, vector<4x8xf32>
    %cst_42 = arith.constant dense<0.000000e+00> : vector<4x32xf32>
    %31 = tpu.matmul %30, %29, %cst_42 {dimension_numbers = #tpu.dot_dimension_numbers<[1], [0], [0], [1], [0, 0, 1, 1], [], []>} : vector<4x8xf32>, vector<8x32xf32>, vector<4x32xf32> -> vector<4x32xf32>
    %c24 = arith.constant 24 : index
    %c0_43 = arith.constant 0 : index
    %32 = vector.load %arg10[%c24, %c0_43] : memref<64x32xf32, #tpu.memory_space<vmem>>, vector<4x32xf32>
    tpu.vector_store %arg10[%c24, %c0_43], %31 {strides = array<i32>} : memref<64x32xf32, #tpu.memory_space<vmem>>, vector<4x32xf32>,
    %c7 = arith.constant 7 : index
    %c0_44 = arith.constant 0 : index
    %33 = tpu.strided_load %arg9[%c7, %c0_44] {strides = array<i32: 16, 1>} : memref<128x32xf32, #tpu.memory_space<vmem>>, vector<8x32xf32>
    %c0_45 = arith.constant 0 : index
    %c0_46 = arith.constant 0 : index
    %34 = vector.load %arg6[%c0_45, %c0_46] : memref<4x8xf32, #tpu.memory_space<vmem>>, vector<4x8xf32>
    %cst_47 = arith.constant dense<0.000000e+00> : vector<4x32xf32>
    %35 = tpu.matmul %34, %33, %cst_47 {dimension_numbers = #tpu.dot_dimension_numbers<[1], [0], [0], [1], [0, 0, 1, 1], [], []>} : vector<4x8xf32>, vector<8x32xf32>, vector<4x32xf32> -> vector<4x32xf32>
    %c28 = arith.constant 28 : index
    %c0_48 = arith.constant 0 : index
    %36 = vector.load %arg10[%c28, %c0_48] : memref<64x32xf32, #tpu.memory_space<vmem>>, vector<4x32xf32>
    tpu.vector_store %arg10[%c28, %c0_48], %35 {strides = array<i32>} : memref<64x32xf32, #tpu.memory_space<vmem>>, vector<4x32xf32>,
    %c8_49 = arith.constant 8 : index
    %c0_50 = arith.constant 0 : index
    %37 = tpu.strided_load %arg9[%c8_49, %c0_50] {strides = array<i32: 16, 1>} : memref<128x32xf32, #tpu.memory_space<vmem>>, vector<8x32xf32>
    %c0_51 = arith.constant 0 : index
    %c0_52 = arith.constant 0 : index
    %38 = vector.load %arg6[%c0_51, %c0_52] : memref<4x8xf32, #tpu.memory_space<vmem>>, vector<4x8xf32>
    %cst_53 = arith.constant dense<0.000000e+00> : vector<4x32xf32>
    %39 = tpu.matmul %38, %37, %cst_53 {dimension_numbers = #tpu.dot_dimension_numbers<[1], [0], [0], [1], [0, 0, 1, 1], [], []>} : vector<4x8xf32>, vector<8x32xf32>, vector<4x32xf32> -> vector<4x32xf32>
    %c32 = arith.constant 32 : index
    %c0_54 = arith.constant 0 : index
    %40 = vector.load %arg10[%c32, %c0_54] : memref<64x32xf32, #tpu.memory_space<vmem>>, vector<4x32xf32>
    tpu.vector_store %arg10[%c32, %c0_54], %39 {strides = array<i32>} : memref<64x32xf32, #tpu.memory_space<vmem>>, vector<4x32xf32>,
    %c9 = arith.constant 9 : index
    %c0_55 = arith.constant 0 : index
    %41 = tpu.strided_load %arg9[%c9, %c0_55] {strides = array<i32: 16, 1>} : memref<128x32xf32, #tpu.memory_space<vmem>>, vector<8x32xf32>
    %c0_56 = arith.constant 0 : index
    %c0_57 = arith.constant 0 : index
    %42 = vector.load %arg6[%c0_56, %c0_57] : memref<4x8xf32, #tpu.memory_space<vmem>>, vector<4x8xf32>
    %cst_58 = arith.constant dense<0.000000e+00> : vector<4x32xf32>
    %43 = tpu.matmul %42, %41, %cst_58 {dimension_numbers = #tpu.dot_dimension_numbers<[1], [0], [0], [1], [0, 0, 1, 1], [], []>} : vector<4x8xf32>, vector<8x32xf32>, vector<4x32xf32> -> vector<4x32xf32>
    %c36 = arith.constant 36 : index
    %c0_59 = arith.constant 0 : index
    %44 = vector.load %arg10[%c36, %c0_59] : memref<64x32xf32, #tpu.memory_space<vmem>>, vector<4x32xf32>
    tpu.vector_store %arg10[%c36, %c0_59], %43 {strides = array<i32>} : memref<64x32xf32, #tpu.memory_space<vmem>>, vector<4x32xf32>,
    %c10 = arith.constant 10 : index
    %c0_60 = arith.constant 0 : index
    %45 = tpu.strided_load %arg9[%c10, %c0_60] {strides = array<i32: 16, 1>} : memref<128x32xf32, #tpu.memory_space<vmem>>, vector<8x32xf32>
    %c0_61 = arith.constant 0 : index
    %c0_62 = arith.constant 0 : index
    %46 = vector.load %arg6[%c0_61, %c0_62] : memref<4x8xf32, #tpu.memory_space<vmem>>, vector<4x8xf32>
    %cst_63 = arith.constant dense<0.000000e+00> : vector<4x32xf32>
    %47 = tpu.matmul %46, %45, %cst_63 {dimension_numbers = #tpu.dot_dimension_numbers<[1], [0], [0], [1], [0, 0, 1, 1], [], []>} : vector<4x8xf32>, vector<8x32xf32>, vector<4x32xf32> -> vector<4x32xf32>
    %c40 = arith.constant 40 : index
    %c0_64 = arith.constant 0 : index
    %48 = vector.load %arg10[%c40, %c0_64] : memref<64x32xf32, #tpu.memory_space<vmem>>, vector<4x32xf32>
    tpu.vector_store %arg10[%c40, %c0_64], %47 {strides = array<i32>} : memref<64x32xf32, #tpu.memory_space<vmem>>, vector<4x32xf32>,
    %c11 = arith.constant 11 : index
    %c0_65 = arith.constant 0 : index
    %49 = tpu.strided_load %arg9[%c11, %c0_65] {strides = array<i32: 16, 1>} : memref<128x32xf32, #tpu.memory_space<vmem>>, vector<8x32xf32>
    %c0_66 = arith.constant 0 : index
    %c0_67 = arith.constant 0 : index
    %50 = vector.load %arg6[%c0_66, %c0_67] : memref<4x8xf32, #tpu.memory_space<vmem>>, vector<4x8xf32>
    %cst_68 = arith.constant dense<0.000000e+00> : vector<4x32xf32>
    %51 = tpu.matmul %50, %49, %cst_68 {dimension_numbers = #tpu.dot_dimension_numbers<[1], [0], [0], [1], [0, 0, 1, 1], [], []>} : vector<4x8xf32>, vector<8x32xf32>, vector<4x32xf32> -> vector<4x32xf32>
    %c44 = arith.constant 44 : index
    %c0_69 = arith.constant 0 : index
    %52 = vector.load %arg10[%c44, %c0_69] : memref<64x32xf32, #tpu.memory_space<vmem>>, vector<4x32xf32>
    tpu.vector_store %arg10[%c44, %c0_69], %51 {strides = array<i32>} : memref<64x32xf32, #tpu.memory_space<vmem>>, vector<4x32xf32>,
    %c12_70 = arith.constant 12 : index
    %c0_71 = arith.constant 0 : index
    %53 = tpu.strided_load %arg9[%c12_70, %c0_71] {strides = array<i32: 16, 1>} : memref<128x32xf32, #tpu.memory_space<vmem>>, vector<8x32xf32>
    %c0_72 = arith.constant 0 : index
    %c0_73 = arith.constant 0 : index
    %54 = vector.load %arg6[%c0_72, %c0_73] : memref<4x8xf32, #tpu.memory_space<vmem>>, vector<4x8xf32>
    %cst_74 = arith.constant dense<0.000000e+00> : vector<4x32xf32>
    %55 = tpu.matmul %54, %53, %cst_74 {dimension_numbers = #tpu.dot_dimension_numbers<[1], [0], [0], [1], [0, 0, 1, 1], [], []>} : vector<4x8xf32>, vector<8x32xf32>, vector<4x32xf32> -> vector<4x32xf32>
    %c48 = arith.constant 48 : index
    %c0_75 = arith.constant 0 : index
    %56 = vector.load %arg10[%c48, %c0_75] : memref<64x32xf32, #tpu.memory_space<vmem>>, vector<4x32xf32>
    tpu.vector_store %arg10[%c48, %c0_75], %55 {strides = array<i32>} : memref<64x32xf32, #tpu.memory_space<vmem>>, vector<4x32xf32>,
    %c13 = arith.constant 13 : index
    %c0_76 = arith.constant 0 : index
    %57 = tpu.strided_load %arg9[%c13, %c0_76] {strides = array<i32: 16, 1>} : memref<128x32xf32, #tpu.memory_space<vmem>>, vector<8x32xf32>
    %c0_77 = arith.constant 0 : index
    %c0_78 = arith.constant 0 : index
    %58 = vector.load %arg6[%c0_77, %c0_78] : memref<4x8xf32, #tpu.memory_space<vmem>>, vector<4x8xf32>
    %cst_79 = arith.constant dense<0.000000e+00> : vector<4x32xf32>
    %59 = tpu.matmul %58, %57, %cst_79 {dimension_numbers = #tpu.dot_dimension_numbers<[1], [0], [0], [1], [0, 0, 1, 1], [], []>} : vector<4x8xf32>, vector<8x32xf32>, vector<4x32xf32> -> vector<4x32xf32>
    %c52 = arith.constant 52 : index
    %c0_80 = arith.constant 0 : index
    %60 = vector.load %arg10[%c52, %c0_80] : memref<64x32xf32, #tpu.memory_space<vmem>>, vector<4x32xf32>
    tpu.vector_store %arg10[%c52, %c0_80], %59 {strides = array<i32>} : memref<64x32xf32, #tpu.memory_space<vmem>>, vector<4x32xf32>,
    %c14 = arith.constant 14 : index
    %c0_81 = arith.constant 0 : index
    %61 = tpu.strided_load %arg9[%c14, %c0_81] {strides = array<i32: 16, 1>} : memref<128x32xf32, #tpu.memory_space<vmem>>, vector<8x32xf32>
    %c0_82 = arith.constant 0 : index
    %c0_83 = arith.constant 0 : index
    %62 = vector.load %arg6[%c0_82, %c0_83] : memref<4x8xf32, #tpu.memory_space<vmem>>, vector<4x8xf32>
    %cst_84 = arith.constant dense<0.000000e+00> : vector<4x32xf32>
    %63 = tpu.matmul %62, %61, %cst_84 {dimension_numbers = #tpu.dot_dimension_numbers<[1], [0], [0], [1], [0, 0, 1, 1], [], []>} : vector<4x8xf32>, vector<8x32xf32>, vector<4x32xf32> -> vector<4x32xf32>
    %c56 = arith.constant 56 : index
    %c0_85 = arith.constant 0 : index
    %64 = vector.load %arg10[%c56, %c0_85] : memref<64x32xf32, #tpu.memory_space<vmem>>, vector<4x32xf32>
    tpu.vector_store %arg10[%c56, %c0_85], %63 {strides = array<i32>} : memref<64x32xf32, #tpu.memory_space<vmem>>, vector<4x32xf32>,
    %c15 = arith.constant 15 : index
    %c0_86 = arith.constant 0 : index
    %65 = tpu.strided_load %arg9[%c15, %c0_86] {strides = array<i32: 16, 1>} : memref<128x32xf32, #tpu.memory_space<vmem>>, vector<8x32xf32>
    %c0_87 = arith.constant 0 : index
    %c0_88 = arith.constant 0 : index
    %66 = vector.load %arg6[%c0_87, %c0_88] : memref<4x8xf32, #tpu.memory_space<vmem>>, vector<4x8xf32>
    %cst_89 = arith.constant dense<0.000000e+00> : vector<4x32xf32>
    %67 = tpu.matmul %66, %65, %cst_89 {dimension_numbers = #tpu.dot_dimension_numbers<[1], [0], [0], [1], [0, 0, 1, 1], [], []>} : vector<4x8xf32>, vector<8x32xf32>, vector<4x32xf32> -> vector<4x32xf32>
    %c60 = arith.constant 60 : index
    %c0_90 = arith.constant 0 : index
    %68 = vector.load %arg10[%c60, %c0_90] : memref<64x32xf32, #tpu.memory_space<vmem>>, vector<4x32xf32>
    tpu.vector_store %arg10[%c60, %c0_90], %67 {strides = array<i32>} : memref<64x32xf32, #tpu.memory_space<vmem>>, vector<4x32xf32>,
    %c0_91 = arith.constant 0 : index
    %c0_92 = arith.constant 0 : index
    %69 = tpu.strided_load %arg10[%c0_91, %c0_92] {strides = array<i32: 4, 1>} : memref<64x32xf32, #tpu.memory_space<vmem>>, vector<16x32xf32>
    %c0_93 = arith.constant 0 : index
    %c0_94 = arith.constant 0 : index
    %70 = vector.load %arg5[%c0_93, %c0_94] : memref<32x16xf32, #tpu.memory_space<vmem>>, vector<32x16xf32>
    %cst_95 = arith.constant dense<0.000000e+00> : vector<32x32xf32>
    %71 = tpu.matmul %70, %69, %cst_95 {dimension_numbers = #tpu.dot_dimension_numbers<[1], [0], [0], [1], [0, 0, 1, 1], [], []>} : vector<32x16xf32>, vector<16x32xf32>, vector<32x32xf32> -> vector<32x32xf32>
    %c0_96 = arith.constant 0 : index
    %c0_97 = arith.constant 0 : index
    %c0_98 = arith.constant 0 : index
    %c0_99 = arith.constant 0 : index
    %72 = vector.load %arg7[%c0_96, %c0_97, %c0_98, %c0_99] : memref<1x4x32x32xf32, #tpu.memory_space<vmem>>, vector<1x1x32x32xf32>
    %73 = vector.shape_cast %72 : vector<1x1x32x32xf32> to vector<32x32xf32>
    %74 = arith.addf %71, %73 : vector<32x32xf32>
    %c0_100 = arith.constant 0 : index
    %c0_101 = arith.constant 0 : index
    %c0_102 = arith.constant 0 : index
    %c0_103 = arith.constant 0 : index
    %75 = vector.load %arg8[%c0_100, %c0_101, %c0_102, %c0_103] : memref<1x4x32x32xf32, #tpu.memory_space<vmem>>, vector<1x1x32x32xf32>
    %76 = vector.shape_cast %75 : vector<1x1x32x32xf32> to vector<32x32xf32>
    %77 = vector.shape_cast %74 : vector<32x32xf32> to vector<1x1x32x32xf32>
    tpu.vector_store %arg8[%c0_100, %c0_101, %c0_102, %c0_103], %77 {strides = array<i32>} : memref<1x4x32x32xf32, #tpu.memory_space<vmem>>, vector<1x1x32x32xf32>,
    %c1_104 = arith.constant 1 : index
    %c0_105 = arith.constant 0 : index
    %78 = tpu.strided_load %arg10[%c1_104, %c0_105] {strides = array<i32: 4, 1>} : memref<64x32xf32, #tpu.memory_space<vmem>>, vector<16x32xf32>
    %c0_106 = arith.constant 0 : index
    %c0_107 = arith.constant 0 : index
    %79 = vector.load %arg5[%c0_106, %c0_107] : memref<32x16xf32, #tpu.memory_space<vmem>>, vector<32x16xf32>
    %cst_108 = arith.constant dense<0.000000e+00> : vector<32x32xf32>
    %80 = tpu.matmul %79, %78, %cst_108 {dimension_numbers = #tpu.dot_dimension_numbers<[1], [0], [0], [1], [0, 0, 1, 1], [], []>} : vector<32x16xf32>, vector<16x32xf32>, vector<32x32xf32> -> vector<32x32xf32>
    %c0_109 = arith.constant 0 : index
    %c1_110 = arith.constant 1 : index
    %c0_111 = arith.constant 0 : index
    %c0_112 = arith.constant 0 : index
    %81 = vector.load %arg7[%c0_109, %c1_110, %c0_111, %c0_112] : memref<1x4x32x32xf32, #tpu.memory_space<vmem>>, vector<1x1x32x32xf32>
    %82 = vector.shape_cast %81 : vector<1x1x32x32xf32> to vector<32x32xf32>
    %83 = arith.addf %80, %82 : vector<32x32xf32>
    %c0_113 = arith.constant 0 : index
    %c1_114 = arith.constant 1 : index
    %c0_115 = arith.constant 0 : index
    %c0_116 = arith.constant 0 : index
    %84 = vector.load %arg8[%c0_113, %c1_114, %c0_115, %c0_116] : memref<1x4x32x32xf32, #tpu.memory_space<vmem>>, vector<1x1x32x32xf32>
    %85 = vector.shape_cast %84 : vector<1x1x32x32xf32> to vector<32x32xf32>
    %86 = vector.shape_cast %83 : vector<32x32xf32> to vector<1x1x32x32xf32>
    tpu.vector_store %arg8[%c0_113, %c1_114, %c0_115, %c0_116], %86 {strides = array<i32>} : memref<1x4x32x32xf32, #tpu.memory_space<vmem>>, vector<1x1x32x32xf32>,
    %c2_117 = arith.constant 2 : index
    %c0_118 = arith.constant 0 : index
    %87 = tpu.strided_load %arg10[%c2_117, %c0_118] {strides = array<i32: 4, 1>} : memref<64x32xf32, #tpu.memory_space<vmem>>, vector<16x32xf32>
    %c0_119 = arith.constant 0 : index
    %c0_120 = arith.constant 0 : index
    %88 = vector.load %arg5[%c0_119, %c0_120] : memref<32x16xf32, #tpu.memory_space<vmem>>, vector<32x16xf32>
    %cst_121 = arith.constant dense<0.000000e+00> : vector<32x32xf32>
    %89 = tpu.matmul %88, %87, %cst_121 {dimension_numbers = #tpu.dot_dimension_numbers<[1], [0], [0], [1], [0, 0, 1, 1], [], []>} : vector<32x16xf32>, vector<16x32xf32>, vector<32x32xf32> -> vector<32x32xf32>
    %c0_122 = arith.constant 0 : index
    %c2_123 = arith.constant 2 : index
    %c0_124 = arith.constant 0 : index
    %c0_125 = arith.constant 0 : index
    %90 = vector.load %arg7[%c0_122, %c2_123, %c0_124, %c0_125] : memref<1x4x32x32xf32, #tpu.memory_space<vmem>>, vector<1x1x32x32xf32>
    %91 = vector.shape_cast %90 : vector<1x1x32x32xf32> to vector<32x32xf32>
    %92 = arith.addf %89, %91 : vector<32x32xf32>
    %c0_126 = arith.constant 0 : index
    %c2_127 = arith.constant 2 : index
    %c0_128 = arith.constant 0 : index
    %c0_129 = arith.constant 0 : index
    %93 = vector.load %arg8[%c0_126, %c2_127, %c0_128, %c0_129] : memref<1x4x32x32xf32, #tpu.memory_space<vmem>>, vector<1x1x32x32xf32>
    %94 = vector.shape_cast %93 : vector<1x1x32x32xf32> to vector<32x32xf32>
    %95 = vector.shape_cast %92 : vector<32x32xf32> to vector<1x1x32x32xf32>
    tpu.vector_store %arg8[%c0_126, %c2_127, %c0_128, %c0_129], %95 {strides = array<i32>} : memref<1x4x32x32xf32, #tpu.memory_space<vmem>>, vector<1x1x32x32xf32>,
    %c3_130 = arith.constant 3 : index
    %c0_131 = arith.constant 0 : index
    %96 = tpu.strided_load %arg10[%c3_130, %c0_131] {strides = array<i32: 4, 1>} : memref<64x32xf32, #tpu.memory_space<vmem>>, vector<16x32xf32>
    %c0_132 = arith.constant 0 : index
    %c0_133 = arith.constant 0 : index
    %97 = vector.load %arg5[%c0_132, %c0_133] : memref<32x16xf32, #tpu.memory_space<vmem>>, vector<32x16xf32>
    %cst_134 = arith.constant dense<0.000000e+00> : vector<32x32xf32>
    %98 = tpu.matmul %97, %96, %cst_134 {dimension_numbers = #tpu.dot_dimension_numbers<[1], [0], [0], [1], [0, 0, 1, 1], [], []>} : vector<32x16xf32>, vector<16x32xf32>, vector<32x32xf32> -> vector<32x32xf32>
    %c0_135 = arith.constant 0 : index
    %c3_136 = arith.constant 3 : index
    %c0_137 = arith.constant 0 : index
    %c0_138 = arith.constant 0 : index
    %99 = vector.load %arg7[%c0_135, %c3_136, %c0_137, %c0_138] : memref<1x4x32x32xf32, #tpu.memory_space<vmem>>, vector<1x1x32x32xf32>
    %100 = vector.shape_cast %99 : vector<1x1x32x32xf32> to vector<32x32xf32>
    %101 = arith.addf %98, %100 : vector<32x32xf32>
    %c0_139 = arith.constant 0 : index
    %c3_140 = arith.constant 3 : index
    %c0_141 = arith.constant 0 : index
    %c0_142 = arith.constant 0 : index
    %102 = vector.load %arg8[%c0_139, %c3_140, %c0_141, %c0_142] : memref<1x4x32x32xf32, #tpu.memory_space<vmem>>, vector<1x1x32x32xf32>
    %103 = vector.shape_cast %102 : vector<1x1x32x32xf32> to vector<32x32xf32>
    %104 = vector.shape_cast %101 : vector<32x32xf32> to vector<1x1x32x32xf32>
    tpu.vector_store %arg8[%c0_139, %c3_140, %c0_141, %c0_142], %104 {strides = array<i32>} : memref<1x4x32x32xf32, #tpu.memory_space<vmem>>, vector<1x1x32x32xf32>,
    return
  }
  func.func @transform_0(%arg0: i32, %arg1: i32, %arg2: i32) -> (i32, i32, i32) {
    %c0_i32 = arith.constant 0 : i32
    %c0_i32_0 = arith.constant 0 : i32
    %c0_i32_1 = arith.constant 0 : i32
    return %arg0, %c0_i32, %c0_i32_0 : i32, i32, i32
  }
  func.func @transform_1(%arg0: i32, %arg1: i32, %arg2: i32) -> (i32, i32) {
    %c0_i32 = arith.constant 0 : i32
    %c0_i32_0 = arith.constant 0 : i32
    return %c0_i32, %arg2 : i32, i32
  }
  func.func @transform_2(%arg0: i32, %arg1: i32, %arg2: i32) -> (i32, i32) {
    %c0_i32 = arith.constant 0 : i32
    %c0_i32_0 = arith.constant 0 : i32
    %c0_i32_1 = arith.constant 0 : i32
    return %c0_i32, %c0_i32_0 : i32, i32
  }
  func.func @transform_3(%arg0: i32, %arg1: i32, %arg2: i32) -> (i32, i32) {
    %c0_i32 = arith.constant 0 : i32
    %c0_i32_0 = arith.constant 0 : i32
    return %arg1, %c0_i32 : i32, i32
  }
  func.func @transform_4(%arg0: i32, %arg1: i32, %arg2: i32) -> (i32, i32, i32, i32) {
    %c0_i32 = arith.constant 0 : i32
    %c0_i32_0 = arith.constant 0 : i32
    return %arg0, %arg1, %c0_i32, %arg2 : i32, i32, i32, i32
  }
  func.func @transform_5(%arg0: i32, %arg1: i32, %arg2: i32) -> (i32, i32, i32, i32) {
    %c0_i32 = arith.constant 0 : i32
    %c0_i32_0 = arith.constant 0 : i32
    return %arg0, %arg1, %c0_i32, %arg2 : i32, i32, i32, i32
  }
}

</mosaic_0001>

<bundles_post_ra>
// kernel: tpu_custom_call.1
= control target key start
LH: loop header
LB: loop body
LE: loop exit
PB: predicated region body
PF: predicated region fallthrough
CT: control target
= control target key end

     0   :  { %10 = vsyncpa [#allocation5], 0  ;;  %s1986_s0 = inlined_call_operand.vmem [shape: f32[2,128,16], index: 0, kind: input, shape index: {}]   ;;  %s1987_s1 = inlined_call_operand.vmem [shape: f32[16,32], index: 1, kind: input, shape index: {}]   ;;  %s1988_s2 = inlined_call_operand.vmem [shape: f32[32,16], index: 2, kind: input, shape index: {}]   ;;  %s1989_s3 = inlined_call_operand.vmem [shape: f32[4,8], index: 3, kind: input, shape index: {}]   ;;  %s1990_s4 = inlined_call_operand.vmem [shape: f32[2,4,32,32], index: 4, kind: input, shape index: {}]   ;;  %s1991_s5 = inlined_call_operand.hbm [shape: f32[2,4,32,32], index: 5, kind: output, shape index: {}]  }
   0x1   :  { %12 = vsyncpa [#allocation5 + $0x1], 0  ;;  %s1658_s18 = smov 0   ;;  %s1660_s19 = smov 0  }
   0x2   :  { %s1662_s20 = smov 0   ;;  %s1664_s21 = smov 0  }
   0x3   :  { %s1666_s22 = smov 0   ;;  %s1668_s23 = smov 0  }
   0x4 LB: > { %s1393_s24 = sadd.s32 4294967295, %s1624_s23   ;;  %s1394_s25 = sadd.s32 4294967294, %s1624_s23   ;;  %s1624_s23 = sphi %s1668_s23, %s18_s23   ;;  %s1620_s22 = sphi %s1666_s22, %s1998_s22   ;;  %s1616_s21 = sphi %s1664_s21, %s1997_s21   ;;  %s1612_s20 = sphi %s1662_s20, %s1996_s20   ;;  %s1608_s19 = sphi %s1660_s19, %s1995_s19   ;;  %s1604_s18 = sphi %s1658_s18, %s1994_s18  }
   0x5   : > { %s37_s26 = sadd.s32 1, %s1620_s22  ;;  %s177_s27 = sadd.s32 1, %s1612_s20 }
   0x6   : > { %p39_p0 = scmp.ge.s32.totalorder %s37_s26, 2  ;;  %p187_p1 = scmp.ne.s32.totalorder %s1612_s20, %s1608_s19 }
   0x7   : > { %p188_p2 = scmp.eq.s32.totalorder %s1393_s24, 1  ;;  %p193_p3 = scmp.ne.s32.totalorder %s1608_s19, %s1604_s18 }
   0x8   : > { %s2000_s26 = smov (%p39_p0, %s37_s26), 0  ;;  %p194_p5 = scmp.eq.s32.totalorder %s1394_s25, 1 }
   0x9   : > { %p1698_p4 = por %p188_p2, %p187_p1  ;;  %s170_s29 = ssub.s32 %s1620_s22, %s2000_s26 }
   0xa   : > { %p1399_p6 = scmp.ge.s32.totalorder %s1624_s23, 1  ;;  %p175_p7 = scmp.eq.s32.totalorder %s170_s29, 0 }
   0xb   : > { %p1705_p8 = por %p194_p5, %p193_p3  ;;  %p254_p9 = scmp.lt.s32.totalorder %s1624_s23, 3 }
   0xc   : > { %s1711_s6 = scalar_select %p175_p7, %s1612_s20, %s177_s27  }
   0xd   : > { %p255_p10 = pnand %p1399_p6, %p254_p9 }
   0xe   : > { %p303_p11 = scmp.lt.s32.totalorder (!%p255_p10), %s1616_s21, 1  ;;  %s300_s17 = sand.u32 (!%p255_p10), 1, %s1608_s19  }
   0xf   : > { %258 = sbr.rel (%p255_p10) target bundleno = 623 (0x26f), region = 40  ;;  %s1400_s24 = sshll.u32 (!%p255_p10), %s300_s17, 7 }
  0x10   : > { %s1900_s7 = scalar_lea.vmem (!%p255_p10), [#allocation4], %s1400_s24  ;;  %s1243_s14 = scalar_lea.sflag (!%p255_p10), [#allocation5], %s300_s17 }
  0x11   : > { %s1259_s10 = sshll.u32 (!%p255_p10), %s1900_s7, 4  ;;  %s1566_s25 = scalar_lea.hbm (!%p255_p10), %s1991_s5, 256  ;;  %s1260_s10 = int_to_ptr.vmem [resolvable:$true] %s1259_s10 }
  0x14   : > { %v348_v0 = vld [vmem:[%s1987_s1 + $0x8] sm:$0xff]  ;;  %v347_v1 = vld [vmem:[%s1987_s1] sm:$0xff]  ;;  %s1721_s11 = scalar_select %p303_p11, %s1616_s21, 1  ;;  %vm349_vm0 = vcmask 130048   ;;  %vm463_vm1 = vcmask 261120   ;;  %vm488_vm2 = vcmask 64512  }
  0x15   : > { %412 = vmatpush.msra.mxu0 %v348_v0  ;;  %1486 = vmatpush.msra.mxu3 %v348_v0  ;;  %v487_v62 = vld [vmem:[%s1989_s3] sm:$0xf]  ;;  %vm512_vm3 = vcmask 257024  }
  0x16   : > { %1485 = vmatpush.msra.mxu1 %v348_v0  ;;  %s1482_s12 = sshll.u32 %s1721_s11, 7  ;;  %s1484_s11 = sshll.u32 %s1616_s21, 7 }
  0x17   : > { %413 = vmatpush.msra.mxu0 %v347_v1  ;;  %1488 = vmatpush.msra.mxu3 %v347_v1  ;;  %s1729_s15 = scalar_lea.vmem %s1986_s0, %s1482_s12  ;;  %s1895_s29 = scalar_lea.vmem %s1990_s4, %s1482_s12 }
  0x18   : > { %1487 = vmatpush.msra.mxu1 %v347_v1  ;;  %v331_v2 = vld [vmem:[%s1729_s15] sm:$0xff]  ;;  %v332_v3 = vld [vmem:[%s1729_s15 + $0x8] sm:$0xff]  ;;  %v333_v4 = vld [vmem:[%s1729_s15 + $0x10] sm:$0xff]  ;;  %s1258_s9 = scalar_lea.hbm %s1991_s5, %s1484_s11 }
  0x19   : > { %1405 = vmatmul.msk.f32.vlgmr.msra.gmra.mxu0 %vm349_vm0, %v331_v2  ;;  %v344_v5 = vld [vmem:[%s1729_s15 + $0x68] sm:$0xff]  ;;  %v334_v6 = vld [vmem:[%s1729_s15 + $0x18] sm:$0xff]  ;;  %v345_v7 = vld [vmem:[%s1729_s15 + $0x70] sm:$0xff]  ;;  %s1261_s13 = sshll.u32 %s1258_s9, 4  ;;  %s1262_s13 = int_to_ptr.hbm [resolvable:$true] %s1261_s13 }
  0x1a   : > { %1418 = vmatmul.msk.f32.vlgmr.msra.gmra.mxu3 %vm349_vm0, %v344_v5  ;;  %v335_v8 = vld [vmem:[%s1729_s15 + $0x20] sm:$0xff]  ;;  %v346_v9 = vld [vmem:[%s1729_s15 + $0x78] sm:$0xff]  ;;  %v336_v10 = vld [vmem:[%s1729_s15 + $0x28] sm:$0xff]  ;;  %s1560_s21 = sshra.s32 %s1262_s13, 4  ;;  %s1561_s21 = int_to_ptr.hbm [resolvable:$true] %s1560_s21 }
  0x1b   : > { %v337_v11 = vld [vmem:[%s1729_s15 + $0x30] sm:$0xff]  ;;  %v343_v12 = vld [vmem:[%s1729_s15 + $0x60] sm:$0xff]  ;;  %v338_v13 = vld [vmem:[%s1729_s15 + $0x38] sm:$0xff]  ;;  %p1567_p1 = scmp.lt.s32.totalorder %s1561_s21, %s1991_s5 }
  0x1c   : > { %1417 = vmatmul.msk.f32.vlgmr.msra.gmra.mxu1 %vm349_vm0, %v343_v12  ;;  %v339_v14 = vld [vmem:[%s1729_s15 + $0x40] sm:$0xff]  ;;  %v340_v15 = vld [vmem:[%s1729_s15 + $0x48] sm:$0xff]  ;;  %v341_v16 = vld [vmem:[%s1729_s15 + $0x50] sm:$0xff] }
  0x1d   : > { %v342_v17 = vld [vmem:[%s1729_s15 + $0x58] sm:$0xff]  ;;  %v621_v12 = vld [vmem:[%s1989_s3] sm:$0xf]  ;;  %s1562_s15 = scalar_lea.hbm %s1561_s21, 128 }
  0x1e   : > { %p1563_p12 = scmp.ne.s32.totalorder %s1561_s21, %s1562_s15  ;;  %p1568_p2 = scmp.lt.s32.totalorder %s1566_s25, %s1562_s15 }
  0x20   : > { %p1564_p13 = pnand %p1563_p12, %p1698_p4  ;;  %p1569_p3 = por %p1568_p2, %p1567_p1 }
  0x21   : > { %1406 = vmatmul.msk.f32.gmra.mxu0 %vm349_vm0, %v332_v3 }
  0x22   : > { %1419 = vmatmul.msk.f32.gmra.mxu3 %vm349_vm0, %v345_v7  ;;  %p1565_p0 = pneg %p1564_p13 }
  0x24   : > { %p1570_p5 = pnand %p1569_p3, %p1565_p0 }
  0x29   : > { %1407 = vmatmul.msk.f32.gmra.mxu0 %vm349_vm0, %v333_v4  ;;  %v555_v4 = vld [vmem:[%s1989_s3] sm:$0xf] }
  0x2a   : > { %1420 = vmatmul.msk.f32.gmra.mxu3 %vm349_vm0, %v346_v9 }
  0x31   : > { %1408 = vmatmul.msk.f32.gmra.mxu0 %vm349_vm0, %v334_v6 }
  0x39   : > { %1409 = vmatmul.msk.f32.gmra.mxu0 %vm349_vm0, %v335_v8 }
  0x41   : > { %1410 = vmatmul.msk.f32.gmra.mxu0 %vm349_vm0, %v336_v10 }
  0x49   : > { %1411 = vmatmul.msk.f32.gmra.mxu0 %vm349_vm0, %v337_v11 }
  0x51   : > { %1412 = vmatmul.msk.f32.gmra.mxu0 %vm349_vm0, %v338_v13 }
  0x59   : > { %1413 = vmatmul.msk.f32.gmra.mxu0 %vm349_vm0, %v339_v14 }
  0x61   : > { %1414 = vmatmul.msk.f32.gmra.mxu0 %vm349_vm0, %v340_v15 }
  0x69   : > { %1415 = vmatmul.msk.f32.gmra.mxu0 %vm349_vm0, %v341_v16 }
  0x71   : > { %1416 = vmatmul.msk.f32.gmra.mxu0 %vm349_vm0, %v342_v17 }
  0x96   : > { %v415_v18 = vpop.f32.mrf.mxu0 }
  0x97   : > { %464 = vst.msk [vmem:[#allocation2] sm:$0xff] %vm463_vm1, %v415_v18 }
  0x99   : > { %v451_v28 = vpop.f32.mrf.mxu1 }
  0x9a   : > { %476 = vst.msk [vmem:[#allocation2 + $0x60] sm:$0xff] %vm463_vm1, %v451_v28 }
  0x9d   : > { %v454_v22 = vpop.f32.mrf.mxu3 }
  0x9e   : > { %v418_v19 = vpop.f32.mrf.mxu0  ;;  %477 = vst.msk [vmem:[#allocation2 + $0x68] sm:$0xff] %vm463_vm1, %v454_v22 }
  0x9f   : > { %465 = vst.msk [vmem:[#allocation2 + $0x8] sm:$0xff] %vm463_vm1, %v418_v19 }
  0xa5   : > { %v457_v24 = vpop.f32.mrf.mxu3 }
  0xa6   : > { %v421_v20 = vpop.f32.mrf.mxu0  ;;  %478 = vst.msk [vmem:[#allocation2 + $0x70] sm:$0xff] %vm463_vm1, %v457_v24 }
  0xa7   : > { %466 = vst.msk [vmem:[#allocation2 + $0x10] sm:$0xff] %vm463_vm1, %v421_v20 }
  0xad   : > { %v460_v26 = vpop.f32.mrf.mxu3  ;;  %v485_v41 = vld [vmem:[#allocation2] ss:$16 sm:$0xc0]  ;;  %v553_v42 = vld [vmem:[#allocation2 + $0x2] ss:$16 sm:$0xc0] }
  0xae   : > { %v424_v21 = vpop.f32.mrf.mxu0  ;;  %479 = vst.msk [vmem:[#allocation2 + $0x78] sm:$0xff] %vm463_vm1, %v460_v26  ;;  %v480_v33 = vld [vmem:[#allocation2] ss:$16 sm:$0x3] }
  0xaf   : > { %467 = vst.msk [vmem:[#allocation2 + $0x18] sm:$0xff] %vm463_vm1, %v424_v21  ;;  %v548_v35 = vld [vmem:[#allocation2 + $0x2] ss:$16 sm:$0x3] }
  0xb0   : > { %v614_v37 = vld [vmem:[#allocation2 + $0x4] ss:$16 sm:$0x3]  ;;  %v515_v39 = vld [vmem:[#allocation2 + $0x1] ss:$16 sm:$0x3] }
  0xb1   : > { %v647_v43 = vld [vmem:[#allocation2 + $0x5] ss:$16 sm:$0x3]  ;;  %v619_v47 = vld [vmem:[#allocation2 + $0x4] ss:$16 sm:$0xc0] }
  0xb2   : > { %v713_v48 = vld [vmem:[#allocation2 + $0x7] ss:$16 sm:$0x3]  ;;  %v581_v50 = vld [vmem:[#allocation2 + $0x3] ss:$16 sm:$0x3] }
  0xb3   : > { %v520_v57 = vld [vmem:[#allocation2 + $0x1] ss:$16 sm:$0xc0]  ;;  %v652_v58 = vld [vmem:[#allocation2 + $0x5] ss:$16 sm:$0xc0] }
  0xb4   : > { %v718_v0 = vld [vmem:[#allocation2 + $0x7] ss:$16 sm:$0xc0]  ;;  %v586_v8 = vld [vmem:[#allocation2 + $0x3] ss:$16 sm:$0xc0] }
  0xb5   : > { %v680_v21 = vld [vmem:[#allocation2 + $0x6] ss:$16 sm:$0x3] }
  0xb6   : > { %v427_v23 = vpop.f32.mrf.mxu0  ;;  %v746_v16 = vld [vmem:[#allocation2 + $0x8] ss:$16 sm:$0x3] }
  0xb7   : > { %468 = vst.msk [vmem:[#allocation2 + $0x20] sm:$0xff] %vm463_vm1, %v427_v23 }
  0xbe   : > { %v430_v25 = vpop.f32.mrf.mxu0 }
  0xbf   : > { %469 = vst.msk [vmem:[#allocation2 + $0x28] sm:$0xff] %vm463_vm1, %v430_v25 }
  0xc6   : > { %v433_v27 = vpop.f32.mrf.mxu0 }
  0xc7   : > { %470 = vst.msk [vmem:[#allocation2 + $0x30] sm:$0xff] %vm463_vm1, %v433_v27 }
  0xce   : > { %v436_v29 = vpop.f32.mrf.mxu0  ;;  %v481_v34 = vld [vmem:[#allocation2] ss:$16 sm:$0xc]  ;;  %v549_v36 = vld [vmem:[#allocation2 + $0x2] ss:$16 sm:$0xc] }
  0xcf   : > { %471 = vst.msk [vmem:[#allocation2 + $0x38] sm:$0xff] %vm463_vm1, %v436_v29  ;;  %v615_v38 = vld [vmem:[#allocation2 + $0x4] ss:$16 sm:$0xc]  ;;  %v482_v45 = vor.u32 %v481_v34, %v480_v33  ;;  %v550_v46 = vor.u32 %v549_v36, %v548_v35 }
  0xd0   : > { %v516_v40 = vld [vmem:[#allocation2 + $0x1] ss:$16 sm:$0xc]  ;;  %v648_v44 = vld [vmem:[#allocation2 + $0x5] ss:$16 sm:$0xc]  ;;  %v616_v55 = vor.u32 %v615_v38, %v614_v37 }
  0xd1   : > { %v714_v49 = vld [vmem:[#allocation2 + $0x7] ss:$16 sm:$0xc]  ;;  %v582_v51 = vld [vmem:[#allocation2 + $0x3] ss:$16 sm:$0xc]  ;;  %v517_v56 = vor.u32 %v516_v40, %v515_v39  ;;  %v649_v63 = vor.u32 %v648_v44, %v647_v43 }
  0xd2   : > { %v715_v6 = vor.u32 %v714_v49, %v713_v48  ;;  %v583_v7 = vor.u32 %v582_v51, %v581_v50  ;;  %v681_v22 = vld [vmem:[#allocation2 + $0x6] ss:$16 sm:$0xc]  ;;  %v812_v29 = vld [vmem:[#allocation2 + $0xa] ss:$16 sm:$0x3] }
  0xd3   : > { %v682_v33 = vor.u32 %v681_v22, %v680_v21  ;;  %v845_v34 = vld [vmem:[#allocation2 + $0xb] ss:$16 sm:$0x3]  ;;  %v911_v35 = vld [vmem:[#allocation2 + $0xd] ss:$16 sm:$0x3] }
  0xd4   : > { %v751_v37 = vld [vmem:[#allocation2 + $0x8] ss:$16 sm:$0xc0]  ;;  %v817_v39 = vld [vmem:[#allocation2 + $0xa] ss:$16 sm:$0xc0] }
  0xd5   : > { %v850_v49 = vld [vmem:[#allocation2 + $0xb] ss:$16 sm:$0xc0]  ;;  %v852_v21 = vld [vmem:[%s1989_s3] sm:$0xf] }
  0xd6   : > { %v439_v30 = vpop.f32.mrf.mxu0  ;;  %v747_v1 = vld [vmem:[#allocation2 + $0x8] ss:$16 sm:$0xc]  ;;  %v813_v20 = vld [vmem:[#allocation2 + $0xa] ss:$16 sm:$0xc] }
  0xd7   : > { %472 = vst.msk [vmem:[#allocation2 + $0x40] sm:$0xff] %vm463_vm1, %v439_v30  ;;  %v846_v25 = vld [vmem:[#allocation2 + $0xb] ss:$16 sm:$0xc]  ;;  %v748_v28 = vor.u32 %v747_v1, %v746_v16 }
  0xd8   : > { %v912_v26 = vld [vmem:[#allocation2 + $0xd] ss:$16 sm:$0xc]  ;;  %v847_v40 = vor.u32 %v846_v25, %v845_v34  ;;  %v944_v1 = vld [vmem:[#allocation2 + $0xe] ss:$16 sm:$0x3] }
  0xde   : > { %v442_v31 = vpop.f32.mrf.mxu0 }
  0xdf   : > { %473 = vst.msk [vmem:[#allocation2 + $0x48] sm:$0xff] %vm463_vm1, %v442_v31 }
  0xe6   : > { %v445_v32 = vpop.f32.mrf.mxu0 }
  0xe7   : > { %474 = vst.msk [vmem:[#allocation2 + $0x50] sm:$0xff] %vm463_vm1, %v445_v32  ;;  %v814_v32 = vor.u32 %v813_v20, %v812_v29  ;;  %v978_v20 = vld [vmem:[#allocation2 + $0xf] ss:$16 sm:$0xc] }
  0xe8   : > { %v982_v29 = vld [vmem:[#allocation2 + $0xf] ss:$16 sm:$0xc0] }
  0xee   : > { %v448_v52 = vpop.f32.mrf.mxu0  ;;  %v483_v53 = vld [vmem:[#allocation2] ss:$16 sm:$0x30]  ;;  %v551_v54 = vld [vmem:[#allocation2 + $0x2] ss:$16 sm:$0x30] }
  0xef   : > { %475 = vst.msk [vmem:[#allocation2 + $0x58] sm:$0xff] %vm463_vm1, %v448_v52  ;;  %v484_v59 = vor.u32 %v483_v53, %v482_v45  ;;  %v552_v60 = vor.u32 %v551_v54, %v550_v46  ;;  %v617_v61 = vld [vmem:[#allocation2 + $0x4] ss:$16 sm:$0x30]  ;;  %v522_v53 = vld [vmem:[%s1989_s3] sm:$0xf] }
  0xf0   : > { %v618_v2 = vor.u32 %v617_v61, %v616_v55  ;;  %v518_v3 = vld [vmem:[#allocation2 + $0x1] ss:$16 sm:$0x30]  ;;  %v650_v5 = vld [vmem:[#allocation2 + $0x5] ss:$16 sm:$0x30] }
  0xf1   : > { %v486_v9 = vor.u32 %v485_v41, %v484_v59  ;;  %v554_v10 = vor.u32 %v553_v42, %v552_v60  ;;  %v519_v11 = vor.u32 %v518_v3, %v517_v56  ;;  %v651_v13 = vor.u32 %v650_v5, %v649_v63  ;;  %v716_v14 = vld [vmem:[#allocation2 + $0x7] ss:$16 sm:$0x30]  ;;  %v584_v15 = vld [vmem:[#allocation2 + $0x3] ss:$16 sm:$0x30] }
  0xf2   : > { %v620_v17 = vor.u32 %v619_v47, %v618_v2  ;;  %v717_v18 = vor.u32 %v716_v14, %v715_v6  ;;  %v585_v19 = vor.u32 %v584_v15, %v583_v7  ;;  %v683_v30 = vld [vmem:[#allocation2 + $0x6] ss:$16 sm:$0x30]  ;;  %v913_v41 = vor.u32 %v912_v26, %v911_v35  ;;  %v654_v54 = vld [vmem:[%s1989_s3] sm:$0xf] }
  0xf3   : > { %507 = vmatpush.msrb.mxu1 %v486_v9  ;;  %574 = vmatpush.msrb.mxu3 %v554_v10  ;;  %v521_v23 = vor.u32 %v520_v57, %v519_v11  ;;  %v653_v24 = vor.u32 %v652_v58, %v651_v13  ;;  %v684_v44 = vor.u32 %v683_v30, %v682_v33  ;;  %v685_v47 = vld [vmem:[#allocation2 + $0x6] ss:$16 sm:$0xc0]  ;;  %v916_v56 = vld [vmem:[#allocation2 + $0xd] ss:$16 sm:$0xc0] }
  0xf4   : > { %640 = vmatpush.msra.mxu2 %v620_v17  ;;  %1421 = vmatmul.msk.f32.vlgmr.msrb.gmra.mxu1 %vm488_vm2, %v487_v62  ;;  %v719_v27 = vor.u32 %v718_v0, %v717_v18  ;;  %v587_v31 = vor.u32 %v586_v8, %v585_v19  ;;  %v780_v57 = vld [vmem:[#allocation2 + $0x9] ss:$16 sm:$0xc]  ;;  %v720_v59 = vld [vmem:[%s1989_s3] sm:$0xf] }
  0xf5   : > { %541 = vmatpush.msra.mxu1 %v521_v23  ;;  %1423 = vmatmul.msk.f32.vlgmr.msrb.gmra.mxu3 %vm488_vm2, %v555_v4  ;;  %v686_v58 = vor.u32 %v685_v47, %v684_v44  ;;  %v945_v61 = vld [vmem:[#allocation2 + $0xe] ss:$16 sm:$0xc]  ;;  %v779_v62 = vld [vmem:[#allocation2 + $0x9] ss:$16 sm:$0x3] }
  0xf6   : > { %1425 = vmatmul.msk.f32.vlgmr.msra.gmra.mxu2 %vm488_vm2, %v621_v12  ;;  %673 = vmatpush.msra.mxu3 %v653_v24  ;;  %v749_v36 = vld [vmem:[#allocation2 + $0x8] ss:$16 sm:$0x30]  ;;  %v815_v38 = vld [vmem:[#allocation2 + $0xa] ss:$16 sm:$0x30]  ;;  %v781_v0 = vor.u32 %v780_v57, %v779_v62  ;;  %v946_v3 = vor.u32 %v945_v61, %v944_v1 }
  0xf7   : > { %739 = vmatpush.msrb.mxu2 %v719_v27  ;;  %607 = vmatpush.msrb.mxu1 %v587_v31  ;;  %v750_v42 = vor.u32 %v749_v36, %v748_v28  ;;  %v816_v43 = vor.u32 %v815_v38, %v814_v32  ;;  %v848_v45 = vld [vmem:[#allocation2 + $0xb] ss:$16 sm:$0x30]  ;;  %v914_v46 = vld [vmem:[#allocation2 + $0xd] ss:$16 sm:$0x30] }
  0xf8   : > { %v849_v48 = vor.u32 %v848_v45, %v847_v40  ;;  %v915_v50 = vor.u32 %v914_v46, %v913_v41  ;;  %v782_v63 = vld [vmem:[#allocation2 + $0x9] ss:$16 sm:$0x30]  ;;  %v947_v2 = vld [vmem:[#allocation2 + $0xe] ss:$16 sm:$0x30] }
  0xf9   : > { %v752_v51 = vor.u32 %v751_v37, %v750_v42  ;;  %v818_v52 = vor.u32 %v817_v39, %v816_v43  ;;  %v783_v4 = vor.u32 %v782_v63, %v781_v0  ;;  %v948_v5 = vor.u32 %v947_v2, %v946_v3  ;;  %v588_v6 = vld [vmem:[%s1989_s3] sm:$0xf]  ;;  %v784_v7 = vld [vmem:[#allocation2 + $0x9] ss:$16 sm:$0xc0] }
  0xfa   : > { %v851_v55 = vor.u32 %v850_v49, %v849_v48  ;;  %v917_v60 = vor.u32 %v916_v56, %v915_v50  ;;  %v753_v8 = vld [vmem:[%s1989_s3] sm:$0xf]  ;;  %v879_v9 = vld [vmem:[#allocation2 + $0xc] ss:$16 sm:$0xc] }
  0xfb   : > { %772 = vmatpush.msrb.mxu3 %v752_v51  ;;  %838 = vmatpush.msra.mxu2 %v818_v52  ;;  %v785_v10 = vor.u32 %v784_v7, %v783_v4  ;;  %v949_v11 = vld [vmem:[#allocation2 + $0xe] ss:$16 sm:$0xc0]  ;;  %v819_v12 = vld [vmem:[%s1989_s3] sm:$0xf] }
  0xfc   : > { %1422 = vmatmul.msk.f32.vlgmr.msra.gmra.mxu1 %vm488_vm2, %v522_v53  ;;  %v950_v13 = vor.u32 %v949_v11, %v948_v5  ;;  %v878_v14 = vld [vmem:[#allocation2 + $0xc] ss:$16 sm:$0x3]  ;;  %v687_v18 = vld [vmem:[%s1989_s3] sm:$0xf] }
  0xfd   : > { %1426 = vmatmul.msk.f32.vlgmr.msra.gmra.mxu3 %vm488_vm2, %v654_v54  ;;  %706 = vmatpush.msra.mxu1 %v686_v58  ;;  %v881_v15 = vld [vmem:[#allocation2 + $0xc] ss:$16 sm:$0x30]  ;;  %v880_v16 = vor.u32 %v879_v9, %v878_v14  ;;  %v918_v23 = vld [vmem:[%s1989_s3] sm:$0xf] }
  0xfe   : > { %1428 = vmatmul.msk.f32.vlgmr.msrb.gmra.mxu2 %vm488_vm2, %v720_v59  ;;  %871 = vmatpush.msra.mxu3 %v851_v55  ;;  %v883_v19 = vld [vmem:[#allocation2 + $0xc] ss:$16 sm:$0xc0]  ;;  %v977_v24 = vld [vmem:[#allocation2 + $0xf] ss:$16 sm:$0x3] }
  0xff   : > { %937 = vmatpush.msrb.mxu2 %v917_v60  ;;  %v882_v17 = vor.u32 %v881_v15, %v880_v16  ;;  %v980_v25 = vld [vmem:[#allocation2 + $0xf] ss:$16 sm:$0x30]  ;;  %v979_v26 = vor.u32 %v978_v20, %v977_v24  ;;  %v786_v28 = vld [vmem:[%s1989_s3] sm:$0xf]  ;;  %v1014_v60 = vld [vmem:[%s1988_s2 + $0x10] sm:$0xff] }
 0x100   : > { %v951_v30 = vld [vmem:[%s1989_s3] sm:$0xf]  ;;  %v1013_v59 = vld [vmem:[%s1988_s2 + $0x8] sm:$0xff]  ;;  %v1015_v61 = vld [vmem:[%s1988_s2 + $0x18] sm:$0xff] }
 0x101   : > { %v884_v22 = vor.u32 %v883_v19, %v882_v17  ;;  %v981_v27 = vor.u32 %v980_v25, %v979_v26  ;;  %v885_v32 = vld [vmem:[%s1989_s3] sm:$0xf]  ;;  %v1454_v7 = vld [vmem:[%s1895_s29 + $0x48] sm:$0xff]  ;;  %v1455_v16 = vld [vmem:[%s1895_s29 + $0x50] sm:$0xff] }
 0x102   : > { %v984_v33 = vld [vmem:[%s1989_s3] sm:$0xf]  ;;  %v1442_v11 = vld [vmem:[%s1895_s29 + $0x28] sm:$0xff]  ;;  %v1018_v19 = vld [vmem:[%s1895_s29 + $0x10] sm:$0xff] }
 0x103   : > { %v983_v31 = vor.u32 %v982_v29, %v981_v27  ;;  %v1012_v55 = vld [vmem:[%s1988_s2] sm:$0xff]  ;;  %v1443_v20 = vld [vmem:[%s1895_s29 + $0x30] sm:$0xff]  ;;  %v1456_v25 = vld [vmem:[%s1895_s29 + $0x58] sm:$0xff] }
 0x104   : > { %1424 = vmatmul.msk.f32.vlgmr.msrb.gmra.mxu1 %vm488_vm2, %v588_v6  ;;  %v1453_v62 = vld [vmem:[%s1895_s29 + $0x40] sm:$0xff]  ;;  %v1444_v29 = vld [vmem:[%s1895_s29 + $0x38] sm:$0xff] }
 0x105   : > { %1429 = vmatmul.msk.f32.vlgmr.msrb.gmra.mxu3 %vm488_vm2, %v753_v8  ;;  %805 = vmatpush.msrb.mxu1 %v785_v10  ;;  %v1016_v1 = vld [vmem:[%s1895_s29] sm:$0xff]  ;;  %v1017_v10 = vld [vmem:[%s1895_s29 + $0x8] sm:$0xff] }
 0x106   : > { %970 = vmatpush.msrb.mxu3 %v950_v13  ;;  %1431 = vmatmul.msk.f32.vlgmr.msra.gmra.mxu2 %vm488_vm2, %v819_v12  ;;  %v1441_v2 = vld [vmem:[%s1895_s29 + $0x20] sm:$0xff] }
 0x10c   : > { %1427 = vmatmul.msk.f32.vlgmr.msra.gmra.mxu1 %vm488_vm2, %v687_v18 }
 0x10d   : > { %904 = vmatpush.msra.mxu1 %v884_v22  ;;  %1432 = vmatmul.msk.f32.vlgmr.msra.gmra.mxu3 %vm488_vm2, %v852_v21 }
 0x10e   : > { %1434 = vmatmul.msk.f32.vlgmr.msrb.gmra.mxu2 %vm488_vm2, %v918_v23 }
 0x114   : > { %1430 = vmatmul.msk.f32.vlgmr.msrb.gmra.mxu1 %vm488_vm2, %v786_v28  ;;  %v1019_v28 = vld [vmem:[%s1895_s29 + $0x18] sm:$0xff] }
 0x115   : > { %1003 = vmatpush.msrb.mxu1 %v983_v31  ;;  %1435 = vmatmul.msk.f32.vlgmr.msrb.gmra.mxu3 %vm488_vm2, %v951_v30 }
 0x11c   : > { %1433 = vmatmul.msk.f32.vlgmr.msra.gmra.mxu1 %vm488_vm2, %v885_v32 }
 0x124   : > { %1436 = vmatmul.msk.f32.vlgmr.msrb.gmra.mxu1 %vm488_vm2, %v984_v33 }
 0x171   : > { %v509_v34 = vpop.f32.mrf.mxu1 }
 0x172   : > { %513 = vst.msk [vmem:[#allocation3] sm:$0xf] %vm512_vm3, %v509_v34  ;;  %v1465_v34 = vld [vmem:[%s1895_s29 + $0x60] sm:$0xff] }
 0x178   : > { %v576_v35 = vpop.f32.mrf.mxu3 }
 0x179   : > { %v543_v36 = vpop.f32.mrf.mxu1  ;;  %579 = vst.msk [vmem:[#allocation3 + $0x8] sm:$0xf] %vm512_vm3, %v576_v35  ;;  %v642_v37 = vpop.f32.mrf.mxu2 }
 0x17a   : > { %546 = vst.msk [vmem:[#allocation3 + $0x4] sm:$0xf] %vm512_vm3, %v543_v36 }
 0x17b   : > { %645 = vst.msk [vmem:[#allocation3 + $0x10] sm:$0xf] %vm512_vm3, %v642_v37  ;;  %v1466_v37 = vld [vmem:[%s1895_s29 + $0x68] sm:$0xff] }
 0x180   : > { %v675_v38 = vpop.f32.mrf.mxu3 }
 0x181   : > { %v609_v39 = vpop.f32.mrf.mxu1  ;;  %678 = vst.msk [vmem:[#allocation3 + $0x14] sm:$0xf] %vm512_vm3, %v675_v38  ;;  %v741_v40 = vpop.f32.mrf.mxu2 }
 0x182   : > { %612 = vst.msk [vmem:[#allocation3 + $0xc] sm:$0xf] %vm512_vm3, %v609_v39 }
 0x183   : > { %744 = vst.msk [vmem:[#allocation3 + $0x1c] sm:$0xf] %vm512_vm3, %v741_v40  ;;  %v1467_v40 = vld [vmem:[%s1895_s29 + $0x70] sm:$0xff] }
 0x188   : > { %v774_v41 = vpop.f32.mrf.mxu3 }
 0x189   : > { %v708_v42 = vpop.f32.mrf.mxu1  ;;  %777 = vst.msk [vmem:[#allocation3 + $0x20] sm:$0xf] %vm512_vm3, %v774_v41  ;;  %v840_v43 = vpop.f32.mrf.mxu2 }
 0x18a   : > { %711 = vst.msk [vmem:[#allocation3 + $0x18] sm:$0xf] %vm512_vm3, %v708_v42 }
 0x18b   : > { %843 = vst.msk [vmem:[#allocation3 + $0x28] sm:$0xf] %vm512_vm3, %v840_v43  ;;  %v1468_v43 = vld [vmem:[%s1895_s29 + $0x78] sm:$0xff] }
 0x190   : > { %v873_v44 = vpop.f32.mrf.mxu3 }
 0x191   : > { %v807_v45 = vpop.f32.mrf.mxu1  ;;  %876 = vst.msk [vmem:[#allocation3 + $0x2c] sm:$0xf] %vm512_vm3, %v873_v44  ;;  %v939_v46 = vpop.f32.mrf.mxu2  ;;  %v1009_v53 = vld [vmem:[#allocation3] ss:$4 sm:$0xff]  ;;  %v1066_v54 = vld [vmem:[#allocation3 + $0x1] ss:$4 sm:$0xff] }
 0x192   : > { %810 = vst.msk [vmem:[#allocation3 + $0x24] sm:$0xf] %vm512_vm3, %v807_v45  ;;  %v1125_v56 = vld [vmem:[#allocation3 + $0x2] ss:$4 sm:$0xff]  ;;  %v1184_v58 = vld [vmem:[#allocation3 + $0x3] ss:$4 sm:$0xff] }
 0x193   : > { %942 = vst.msk [vmem:[#allocation3 + $0x34] sm:$0xf] %vm512_vm3, %v939_v46 }
 0x198   : > { %v972_v47 = vpop.f32.mrf.mxu3 }
 0x199   : > { %v906_v48 = vpop.f32.mrf.mxu1  ;;  %975 = vst.msk [vmem:[#allocation3 + $0x38] sm:$0xf] %vm512_vm3, %v972_v47 }
 0x19a   : > { %909 = vst.msk [vmem:[#allocation3 + $0x30] sm:$0xf] %vm512_vm3, %v906_v48 }
 0x1a1   : > { %v1005_v49 = vpop.f32.mrf.mxu1 }
 0x1a2   : > { %1008 = vst.msk [vmem:[#allocation3 + $0x3c] sm:$0xf] %vm512_vm3, %v1005_v49 }
 0x1a9   : > { %v1011_v50 = vld [vmem:[#allocation3 + $0x20] ss:$4 sm:$0xff]  ;;  %v1068_v51 = vld [vmem:[#allocation3 + $0x21] ss:$4 sm:$0xff]  ;;  %v1127_v52 = vld [vmem:[#allocation3 + $0x22] ss:$4 sm:$0xff] }
 0x1aa   : > { %1046 = vmatpush.msra.mxu2 %v1011_v50  ;;  %1104 = vmatpush.msra.mxu3 %v1068_v51  ;;  %v1186_v57 = vld [vmem:[#allocation3 + $0x23] ss:$4 sm:$0xff] }
 0x1ab   : > { %1163 = vmatpush.msra.mxu1 %v1127_v52 }
 0x1ac   : > { %1047 = vmatpush.msra.mxu2 %v1009_v53  ;;  %1105 = vmatpush.msra.mxu3 %v1066_v54 }
 0x1ad   : > { %1164 = vmatpush.msra.mxu1 %v1125_v56  ;;  %1437 = vmatmul.msk.f32.vlgmr.msra.gmra.mxu2 %vm349_vm0, %v1012_v55 }
 0x1ae   : > { %1222 = vmatpush.msrb.mxu2 %v1186_v57  ;;  %1445 = vmatmul.msk.f32.vlgmr.msra.gmra.mxu3 %vm349_vm0, %v1012_v55 }
 0x1af   : > { %1457 = vmatmul.msk.f32.vlgmr.msra.gmra.mxu1 %vm349_vm0, %v1012_v55 }
 0x1b0   : > { %1223 = vmatpush.msrb.mxu2 %v1184_v58 }
 0x1b5   : > { %1438 = vmatmul.msk.f32.gmra.mxu2 %vm349_vm0, %v1013_v59 }
 0x1b6   : > { %1446 = vmatmul.msk.f32.gmra.mxu3 %vm349_vm0, %v1013_v59 }
 0x1b7   : > { %1458 = vmatmul.msk.f32.gmra.mxu1 %vm349_vm0, %v1013_v59 }
 0x1bd   : > { %1439 = vmatmul.msk.f32.gmra.mxu2 %vm349_vm0, %v1014_v60 }
 0x1be   : > { %1447 = vmatmul.msk.f32.gmra.mxu3 %vm349_vm0, %v1014_v60 }
 0x1bf   : > { %1459 = vmatmul.msk.f32.gmra.mxu1 %vm349_vm0, %v1014_v60 }
 0x1c5   : > { %1440 = vmatmul.msk.f32.gmra.mxu2 %vm349_vm0, %v1015_v61 }
 0x1c6   : > { %1448 = vmatmul.msk.f32.gmra.mxu3 %vm349_vm0, %v1015_v61 }
 0x1c7   : > { %1460 = vmatmul.msk.f32.gmra.mxu1 %vm349_vm0, %v1015_v61 }
 0x1cd   : > { %1469 = vmatmul.msk.f32.vlgmr.msrb.gmra.mxu2 %vm349_vm0, %v1012_v55 }
 0x1d5   : > { %1470 = vmatmul.msk.f32.gmra.mxu2 %vm349_vm0, %v1013_v59 }
 0x1dd   : > { %1471 = vmatmul.msk.f32.gmra.mxu2 %vm349_vm0, %v1014_v60 }
 0x1e5   : > { %1472 = vmatmul.msk.f32.gmra.mxu2 %vm349_vm0, %v1015_v61 }
 0x22c   : > { %v1166_v63 = vpop.f32.mrf.mxu1 }
 0x22d   : > { %v1167_v0 = vadd.f32 %v1453_v62, %v1166_v63 }
 0x22f   : > { %1461 = vst.msk [vmem:[%s1900_s7 + $0x40] sm:$0xff] %vm463_vm1, %v1167_v0 }
 0x230   : > { %v1049_v3 = vpop.f32.mrf.mxu2 }
 0x231   : > { %v1107_v4 = vpop.f32.mrf.mxu3  ;;  %v1050_v5 = vadd.f32 %v1049_v3, %v1016_v1 }
 0x232   : > { %v1108_v6 = vadd.f32 %v1441_v2, %v1107_v4 }
 0x233   : > { %1061 = vst.msk [vmem:[%s1900_s7] sm:$0xff] %vm463_vm1, %v1050_v5 }
 0x234   : > { %v1169_v8 = vpop.f32.mrf.mxu1  ;;  %1449 = vst.msk [vmem:[%s1900_s7 + $0x20] sm:$0xff] %vm463_vm1, %v1108_v6 }
 0x235   : > { %v1170_v9 = vadd.f32 %v1454_v7, %v1169_v8 }
 0x237   : > { %1462 = vst.msk [vmem:[%s1900_s7 + $0x48] sm:$0xff] %vm463_vm1, %v1170_v9 }
 0x238   : > { %v1052_v12 = vpop.f32.mrf.mxu2 }
 0x239   : > { %v1110_v13 = vpop.f32.mrf.mxu3  ;;  %v1053_v14 = vadd.f32 %v1052_v12, %v1017_v10 }
 0x23a   : > { %v1111_v15 = vadd.f32 %v1442_v11, %v1110_v13 }
 0x23b   : > { %1062 = vst.msk [vmem:[%s1900_s7 + $0x8] sm:$0xff] %vm463_vm1, %v1053_v14 }
 0x23c   : > { %v1172_v17 = vpop.f32.mrf.mxu1  ;;  %1450 = vst.msk [vmem:[%s1900_s7 + $0x28] sm:$0xff] %vm463_vm1, %v1111_v15 }
 0x23d   : > { %v1173_v18 = vadd.f32 %v1455_v16, %v1172_v17 }
 0x23f   : > { %1463 = vst.msk [vmem:[%s1900_s7 + $0x50] sm:$0xff] %vm463_vm1, %v1173_v18 }
 0x240   : > { %v1055_v21 = vpop.f32.mrf.mxu2 }
 0x241   : > { %v1113_v22 = vpop.f32.mrf.mxu3  ;;  %v1056_v23 = vadd.f32 %v1055_v21, %v1018_v19 }
 0x242   : > { %v1114_v24 = vadd.f32 %v1443_v20, %v1113_v22 }
 0x243   : > { %1063 = vst.msk [vmem:[%s1900_s7 + $0x10] sm:$0xff] %vm463_vm1, %v1056_v23 }
 0x244   : > { %v1175_v26 = vpop.f32.mrf.mxu1  ;;  %1451 = vst.msk [vmem:[%s1900_s7 + $0x30] sm:$0xff] %vm463_vm1, %v1114_v24 }
 0x245   : > { %v1176_v27 = vadd.f32 %v1456_v25, %v1175_v26 }
 0x247   : > { %1464 = vst.msk [vmem:[%s1900_s7 + $0x58] sm:$0xff] %vm463_vm1, %v1176_v27 }
 0x248   : > { %v1058_v30 = vpop.f32.mrf.mxu2 }
 0x249   : > { %v1116_v31 = vpop.f32.mrf.mxu3  ;;  %v1059_v32 = vadd.f32 %v1058_v30, %v1019_v28 }
 0x24a   : > { %v1117_v33 = vadd.f32 %v1444_v29, %v1116_v31 }
 0x24b   : > { %1064 = vst.msk [vmem:[%s1900_s7 + $0x18] sm:$0xff] %vm463_vm1, %v1059_v32 }
 0x24c   : > { %1452 = vst.msk [vmem:[%s1900_s7 + $0x38] sm:$0xff] %vm463_vm1, %v1117_v33 }
 0x250   : > { %v1225_v35 = vpop.f32.mrf.mxu2 }
 0x251   : > { %v1226_v36 = vadd.f32 %v1465_v34, %v1225_v35 }
 0x253   : > { %1473 = vst.msk [vmem:[%s1900_s7 + $0x60] sm:$0xff] %vm463_vm1, %v1226_v36 }
 0x258   : > { %v1228_v38 = vpop.f32.mrf.mxu2 }
 0x259   : > { %v1229_v39 = vadd.f32 %v1466_v37, %v1228_v38 }
 0x25b   : > { %1474 = vst.msk [vmem:[%s1900_s7 + $0x68] sm:$0xff] %vm463_vm1, %v1229_v39 }
 0x260   : > { %v1231_v41 = vpop.f32.mrf.mxu2 }
 0x261   : > { %v1232_v42 = vadd.f32 %v1467_v40, %v1231_v41 }
 0x263   : > { %1475 = vst.msk [vmem:[%s1900_s7 + $0x70] sm:$0xff] %vm463_vm1, %v1232_v42 }
 0x268   : > { %v1234_v44 = vpop.f32.mrf.mxu2 }
 0x269   : > { %v1235_v45 = vadd.f32 %v1468_v43, %v1234_v44 }
 0x26b   : > { %1476 = vst.msk [vmem:[%s1900_s7 + $0x78] sm:$0xff] %vm463_vm1, %v1235_v45 }
 0x26c   : > { %1573 = shalt.err (!%p1570_p5)
}
 0x26d   : > { %s1626_s17 = smov 128   ;;  %s1627_s7 = smov 8  }
 0x26e   : > { %1489 = dma.vmem_to_hbm [thread:$0]  (%p1698_p4), %s1260_s10, 2048, %s1262_s13, %s1243_s14, %s1626_s17, %s1626_s17, %s1627_s7  }
 0x26f PF: > { %p1495_p6 = scmp.ge.s32.totalorder %s1624_s23, 2  ;;  %s1276_s11 = sand.u32 1, %s1604_s18  }
 0x270   : > { %s1277_s12 = scalar_lea.sflag [#allocation5], %s1276_s11 }
 0x271   : > { %p1492_p7 = pnand %p1495_p6, %p1705_p8 }
 0x273   : > { %p1493_p9 = pneg %p1492_p7 }
 0x275   : > { %1599 = dma.done.wait (%p1493_p9), %s1277_s12, 2048  }
 0x276   : > { %1601 = vsyncadd (%p1493_p9), %s1277_s12, 4294965248  ;;  %s18_s23 = sadd.s32 1, %s1624_s23   ;;  %s1994_s18 = smov %s1608_s19 }
 0x277   : > { %p15_p10 = scmp.ge.s32.totalorder %s18_s23, 4   ;;  %s1995_s19 = smov %s1612_s20 }
 0x278   : > { %s1996_s20 = smov %s1711_s6  ;;  %s1997_s21 = smov %s1620_s22 }
 0x279   : > { %s1998_s22 = smov %s2000_s26  ;;  %17 = sbr.rel (!%p15_p10) target bundleno = 4 (0x4), region = 112 }
 0x27e   :  { %1283 = vsyncpa [#allocation5], 1 }
 0x27f   :  { %1285 = vsyncpa [#allocation5 + $0x1], 1 }

</bundles_post_ra>
